<compile_context>
chip_gen: v7x
topology: tpu7x:2x2x1
jax: 0.10.0
libtpu: 0.0.40
codegen_flags: <defaults>
</compile_context>

<pallas_src>
import math
from functools import partial

import jax
import jax.numpy as jnp
from jax.experimental import pallas as pl
from jax.experimental.pallas import tpu as pltpu

LN_EPS = 1e-12            # BERT LayerNorm epsilon
_INV_SQRT2 = 1.0 / math.sqrt(2.0)


def _pick_vmem_limit():
    """Generation-aware scoped-VMEM limit: ~0.75x physical capacity."""
    try:
        info = pltpu.get_tpu_info()
        cap = int(getattr(info, "vmem_capacity_bytes", 0) or 0)
        if cap > 0:
            return (cap * 3) // 4
    except Exception:
        pass
    return 48 * 1024 * 1024   # safe on every generation (v7x physical = 64 MiB)


_VMEM_LIMIT = _pick_vmem_limit()


def _tile(dim, pref, mult=128):
    """Largest tile <= pref dividing dim; prefer 128-multiples, then pow2, else dim."""
    if dim <= pref:
        return dim
    t = (pref // mult) * mult
    while t >= mult:
        if dim % t == 0:
            return t
        t -= mult
    t = pref
    while t >= 8:
        if dim % t == 0:
            return t
        t //= 2
    return dim


# ----------------------------- Pallas kernels -------------------------------

def _matmul_bias_kernel(x_ref, w_ref, b_ref, o_ref, acc_ref, *, activation):
    """Tiled matmul: acc += x @ w; bias (+ optional exact erf-GELU) epilogue."""
    @pl.when(pl.program_id(2) == 0)
    def _():
        acc_ref[...] = jnp.zeros_like(acc_ref)

    acc_ref[...] += jnp.dot(x_ref[...], w_ref[...],
                            preferred_element_type=jnp.float32)

    @pl.when(pl.program_id(2) == pl.num_programs(2) - 1)
    def _():
        y = acc_ref[...] + b_ref[...]
        if activation == "gelu":
            # exact (erf-based) GELU as in HF BERT.
            # TODO(synk): switch to tanh-form GELU (EUP slot) only if bundle
            # attribution shows this epilogue VALU-bound.
            y = 0.5 * y * (1.0 + jax.lax.erf(y * _INV_SQRT2))
        o_ref[...] = y.astype(o_ref.dtype)


def matmul_bias(x, w, b, activation=None, *, tm=1024, tn=256, tk=512):
    """y = act(x @ w + b); bf16 operands, f32 accumulation, bf16 output."""
    M, K = x.shape
    N = w.shape[1]
    tm, tn, tk = _tile(M, tm), _tile(N, tn), _tile(K, tk)
    return pl.pallas_call(
        partial(_matmul_bias_kernel, activation=activation),
        out_shape=jax.ShapeDtypeStruct((M, N), jnp.bfloat16),
        grid=(M // tm, N // tn, K // tk),
        in_specs=[pl.BlockSpec((tm, tk), lambda i, j, k: (i, k)),
                  # TODO(synk): add pipeline_mode=pl.Buffered(3) here on v5e if
                  # xprof shows the weight-stream DMA exposed.
                  pl.BlockSpec((tk, tn), lambda i, j, k: (k, j)),
                  pl.BlockSpec((1, tn), lambda i, j, k: (0, j))],
        out_specs=pl.BlockSpec((tm, tn), lambda i, j, k: (i, j)),
        scratch_shapes=[pltpu.VMEM((tm, tn), jnp.float32)],
        compiler_params=pltpu.CompilerParams(
            dimension_semantics=("parallel", "parallel", "arbitrary"),
            vmem_limit_bytes=_VMEM_LIMIT),
    )(x, w, b.reshape(1, N).astype(jnp.float32))


def _matmul_res_ln_kernel(x_ref, w_ref, b_ref, r_ref, g_ref, beta_ref,
                          o_ref, acc_ref):
    """Tiled matmul with fused epilogue: LayerNorm(x @ w + b + residual)."""
    @pl.when(pl.program_id(1) == 0)
    def _():
        acc_ref[...] = jnp.zeros_like(acc_ref)

    acc_ref[...] += jnp.dot(x_ref[...], w_ref[...],
                            preferred_element_type=jnp.float32)

    @pl.when(pl.program_id(1) == pl.num_programs(1) - 1)
    def _():
        y = acc_ref[...] + b_ref[...] + r_ref[...].astype(jnp.float32)
        mu = jnp.mean(y, axis=-1, keepdims=True)
        yc = y - mu
        var = jnp.mean(yc * yc, axis=-1, keepdims=True)
        inv = jax.lax.rsqrt(var + LN_EPS)
        o_ref[...] = (yc * inv * g_ref[...] + beta_ref[...]).astype(o_ref.dtype)


def matmul_res_ln(x, w, b, residual, gamma, beta, *, tm=512, tk=512):
    """y = LayerNorm(x @ w + b + residual); N kept full so LN sees whole rows."""
    M, K = x.shape
    N = w.shape[1]
    tm, tk = _tile(M, tm), _tile(K, tk)
    return pl.pallas_call(
        _matmul_res_ln_kernel,
        out_shape=jax.ShapeDtypeStruct((M, N), jnp.bfloat16),
        grid=(M // tm, K // tk),
        in_specs=[pl.BlockSpec((tm, tk), lambda i, k: (i, k)),
                  pl.BlockSpec((tk, N), lambda i, k: (k, 0)),
                  pl.BlockSpec((1, N), lambda i, k: (0, 0)),
                  pl.BlockSpec((tm, N), lambda i, k: (i, 0)),
                  pl.BlockSpec((1, N), lambda i, k: (0, 0)),
                  pl.BlockSpec((1, N), lambda i, k: (0, 0))],
        out_specs=pl.BlockSpec((tm, N), lambda i, k: (i, 0)),
        scratch_shapes=[pltpu.VMEM((tm, N), jnp.float32)],
        compiler_params=pltpu.CompilerParams(
            dimension_semantics=("parallel", "arbitrary"),
            vmem_limit_bytes=_VMEM_LIMIT),
    )(x, w, b.reshape(1, N).astype(jnp.float32), residual,
      gamma.reshape(1, N).astype(jnp.float32),
      beta.reshape(1, N).astype(jnp.float32))


def _embed_ln_kernel(we_ref, pe_ref, te_ref, g_ref, b_ref, o_ref):
    """Fused embedding sum (word + position + token-type) + LayerNorm."""
    x = (we_ref[...].astype(jnp.float32) + pe_ref[...].astype(jnp.float32)
         + te_ref[...].astype(jnp.float32))
    mu = jnp.mean(x, axis=-1, keepdims=True)
    xc = x - mu
    var = jnp.mean(xc * xc, axis=-1, keepdims=True)
    inv = jax.lax.rsqrt(var + LN_EPS)
    o_ref[...] = (xc * inv * g_ref[...] + b_ref[...]).astype(o_ref.dtype)


def embed_layernorm(we, pe, te, gamma, beta, B, S, H):
    """we: (B,S,H) gathered word embeddings; pe: (S,H); te: (1,H) -> (B*S,H) bf16."""
    return pl.pallas_call(
        _embed_ln_kernel,
        out_shape=jax.ShapeDtypeStruct((B * S, H), jnp.bfloat16),
        grid=(B,),
        in_specs=[pl.BlockSpec((None, S, H), lambda b: (b, 0, 0)),
                  pl.BlockSpec((S, H), lambda b: (0, 0)),
                  pl.BlockSpec((1, H), lambda b: (0, 0)),
                  pl.BlockSpec((1, H), lambda b: (0, 0)),
                  pl.BlockSpec((1, H), lambda b: (0, 0))],
        out_specs=pl.BlockSpec((S, H), lambda b: (b, 0)),
        compiler_params=pltpu.CompilerParams(
            dimension_semantics=("parallel",),
            vmem_limit_bytes=_VMEM_LIMIT),
    )(we, pe, te.reshape(1, H).astype(jnp.float32),
      gamma.reshape(1, H).astype(jnp.float32),
      beta.reshape(1, H).astype(jnp.float32))


def _attention_kernel(qkv_ref, m_ref, o_ref, ctx_ref, *, nH, Dh):
    """Per-batch multi-head attention straight from the fused (S, 3H) QKV slab.

    The 1/sqrt(Dh) scale is already folded into the Q projection weights.
    Per-head contexts go into an (S, H) f32 VMEM slab; one cast + lane-dense
    store at the end (no jnp.concatenate, no extra lane shuffles).
    """
    H = nH * Dh
    qkv = qkv_ref[...]                                 # (S, 3H) bf16
    mask = m_ref[...]                                  # (1, S) f32, 1=token 0=pad
    add_bias = (mask - 1.0) * 10000.0                  # additive key mask
    for h in range(nH):
        q = qkv[:, h * Dh:(h + 1) * Dh]
        k = qkv[:, H + h * Dh: H + (h + 1) * Dh]
        v = qkv[:, 2 * H + h * Dh: 2 * H + (h + 1) * Dh]
        # contract last axes -> no materialized k.T
        # TODO(synk): pre-transpose K only if bundle shows XLU contention.
        s = jax.lax.dot_general(q, k, (((1,), (1,)), ((), ())),
                                preferred_element_type=jnp.float32)
        s = s + add_bias
        s = s - jnp.max(s, axis=-1, keepdims=True)
        p = jnp.exp(s)                                  # f32 exp (safe on all gens)
        p = p * pl.reciprocal(jnp.sum(p, axis=-1, keepdims=True), approx=True)
        ctx_ref[:, h * Dh:(h + 1) * Dh] = jnp.dot(
            p.astype(v.dtype), v, preferred_element_type=jnp.float32)
    o_ref[...] = ctx_ref[...].astype(o_ref.dtype)


def mha_attention(qkv, attention_mask, B, S, nH, Dh):
    """qkv: (B*S, 3H) fused slab -> context (B*S, H)."""
    H = nH * Dh
    mask3 = attention_mask.astype(jnp.float32).reshape(B, 1, S)
    # TODO(synk): for v7x at small batch, add a query-block grid axis so both
    # TensorCores stay busy during attention.
    return pl.pallas_call(
        partial(_attention_kernel, nH=nH, Dh=Dh),
        out_shape=jax.ShapeDtypeStruct((B * S, H), jnp.bfloat16),
        grid=(B,),
        in_specs=[pl.BlockSpec((S, 3 * H), lambda b: (b, 0)),
                  pl.BlockSpec((None, 1, S), lambda b: (b, 0, 0))],
        out_specs=pl.BlockSpec((S, H), lambda b: (b, 0)),
        scratch_shapes=[pltpu.VMEM((S, H), jnp.float32)],
        compiler_params=pltpu.CompilerParams(
            dimension_semantics=("parallel",),
            vmem_limit_bytes=_VMEM_LIMIT),
    )(qkv, mask3)


def _cls_attention_kernel(q_ref, kv_ref, m_ref, o_ref, ctx_ref, *, nH, Dh):
    """Final-layer attention for the single CLS query row of one batch element."""
    H = nH * Dh
    q = q_ref[...]                                     # (1, H) bf16 (scale folded in)
    kv = kv_ref[...]                                   # (S, 2H) bf16
    add_bias = (m_ref[...] - 1.0) * 10000.0            # (1, S)
    for h in range(nH):
        qh = q[:, h * Dh:(h + 1) * Dh]
        k = kv[:, h * Dh:(h + 1) * Dh]
        v = kv[:, H + h * Dh: H + (h + 1) * Dh]
        s = jax.lax.dot_general(qh, k, (((1,), (1,)), ((), ())),
                                preferred_element_type=jnp.float32)   # (1, S)
        s = s + add_bias
        s = s - jnp.max(s, axis=-1, keepdims=True)
        p = jnp.exp(s)
        p = p * pl.reciprocal(jnp.sum(p, axis=-1, keepdims=True), approx=True)
        ctx_ref[:, h * Dh:(h + 1) * Dh] = jnp.dot(
            p.astype(v.dtype), v, preferred_element_type=jnp.float32)
    o_ref[...] = ctx_ref[...].astype(o_ref.dtype)


def cls_attention(q_cls, kv, attention_mask, B, S, nH, Dh):
    """q_cls: (B, H) CLS queries; kv: (B*S, 2H) -> (B, H) CLS contexts."""
    H = nH * Dh
    q3 = q_cls.reshape(B, 1, H)
    mask3 = attention_mask.astype(jnp.float32).reshape(B, 1, S)
    out = pl.pallas_call(
        partial(_cls_attention_kernel, nH=nH, Dh=Dh),
        out_shape=jax.ShapeDtypeStruct((B, 1, H), jnp.bfloat16),
        grid=(B,),
        in_specs=[pl.BlockSpec((None, 1, H), lambda b: (b, 0, 0)),
                  pl.BlockSpec((S, 2 * H), lambda b: (b, 0)),
                  pl.BlockSpec((None, 1, S), lambda b: (b, 0, 0))],
        out_specs=pl.BlockSpec((None, 1, H), lambda b: (b, 0, 0)),
        scratch_shapes=[pltpu.VMEM((1, H), jnp.float32)],
        compiler_params=pltpu.CompilerParams(
            dimension_semantics=("parallel",),
            vmem_limit_bytes=_VMEM_LIMIT),
    )(q3, kv, mask3)
    return out.reshape(B, H)


# ------------------------------ BERT forward --------------------------------

def bert_layer_full(h, p, attention_mask, B, S, nH, Dh):
    """Standard encoder layer over all rows -> (B*S, H) bf16."""
    qkv = matmul_bias(h, p["qkv_w"], p["qkv_b"])                  # (B*S, 3H)
    ctx = mha_attention(qkv, attention_mask, B, S, nH, Dh)        # (B*S, H)
    h = matmul_res_ln(ctx, p["ao_w"], p["ao_b"], h, p["ln1_g"], p["ln1_b"])
    ffn = matmul_bias(h, p["f1_w"], p["f1_b"], activation="gelu")
    h = matmul_res_ln(ffn, p["f2_w"], p["f2_b"], h, p["ln2_g"], p["ln2_b"])
    return h


def bert_layer_cls(h, p, attention_mask, B, S, nH, Dh):
    """Final encoder layer: only the B CLS rows go through Q / attn-out / FFN / LNs.

    K/V projections still need all rows. Exactly equivalent to the full layer
    restricted to sequence position 0 (no causal mask in BERT).
    """
    H = nH * Dh
    q_w, kv_w = p["qkv_w"][:, :H], p["qkv_w"][:, H:]              # cheap slices (glue)
    q_b, kv_b = p["qkv_b"][:H], p["qkv_b"][H:]
    h_cls = h.reshape(B, S, H)[:, 0, :]                           # (B, H) glue slice

    kv = matmul_bias(h, kv_w, kv_b)                               # (B*S, 2H)
    q_cls = matmul_bias(h_cls, q_w, q_b)                          # (B, H)
    ctx = cls_attention(q_cls, kv, attention_mask, B, S, nH, Dh)  # (B, H)

    hc = matmul_res_ln(ctx, p["ao_w"], p["ao_b"], h_cls, p["ln1_g"], p["ln1_b"])
    ffn = matmul_bias(hc, p["f1_w"], p["f1_b"], activation="gelu")
    hc = matmul_res_ln(ffn, p["f2_w"], p["f2_b"], hc, p["ln2_g"], p["ln2_b"])
    return hc                                                     # (B, H)


def encoder_bert_forward(params, input_ids, attention_mask, *, nH, Dh):
    B, S = input_ids.shape
    H = nH * Dh
    # Embedding gather is glue (plain JAX); the add + LayerNorm is fused in-kernel.
    we = jnp.take(params["word_emb"], input_ids, axis=0)           # (B, S, H)
    pe = params["pos_emb"][:S]                                     # (S, H)
    te = params["tok_emb"][0]                                      # token_type_ids = 0
    h = embed_layernorm(we, pe, te, params["ln_e_g"], params["ln_e_b"], B, S, H)

    n_layers = len(params["layers"])
    cls = None
    for li, lp in enumerate(params["layers"]):
        if li < n_layers - 1:
            h = bert_layer_full(h, lp, attention_mask, B, S, nH, Dh)
        else:
            cls = bert_layer_cls(h, lp, attention_mask, B, S, nH, Dh)
    # outputs.hidden_states[-1].permute(1, 0, 2)[0]  ==  CLS hidden state
    return cls.astype(jnp.float32)


# ----------------------------- Param synthesis -------------------------------

def init_params(key, vocab, max_pos, H, nH, intermediate, n_layers):
    std = 0.02
    Dh = H // nH
    scale = 1.0 / math.sqrt(Dh)
    k_emb, k_pos, k_tok, k_layers = jax.random.split(key, 4)
    params = {
        "word_emb": std * jax.random.normal(k_emb, (vocab, H), jnp.float32),
        "pos_emb": std * jax.random.normal(k_pos, (max_pos, H), jnp.float32),
        "tok_emb": std * jax.random.normal(k_tok, (2, H), jnp.float32),
        "ln_e_g": jnp.ones((H,), jnp.float32),
        "ln_e_b": jnp.zeros((H,), jnp.float32),
        "layers": [],
    }
    lkeys = jax.random.split(k_layers, n_layers)
    for lk in lkeys:
        ks = jax.random.split(lk, 6)
        q_w = std * jax.random.normal(ks[0], (H, H), jnp.float32)
        k_w = std * jax.random.normal(ks[1], (H, H), jnp.float32)
        v_w = std * jax.random.normal(ks[2], (H, H), jnp.float32)
        q_b = jnp.zeros((H,), jnp.float32)
        k_b = jnp.zeros((H,), jnp.float32)
        v_b = jnp.zeros((H,), jnp.float32)
        lp = {
            # fused QKV weight (H, 3H); the 1/sqrt(Dh) softmax scale is folded
            # into the Q third (in f32, before the bf16 cast). When loading real
            # HF weights, scale the Q bias identically.
            "qkv_w": jnp.concatenate([q_w * scale, k_w, v_w],
                                     axis=1).astype(jnp.bfloat16),
            "qkv_b": jnp.concatenate([q_b * scale, k_b, v_b], axis=0),
            "ao_w": (std * jax.random.normal(ks[3], (H, H), jnp.float32)
                     ).astype(jnp.bfloat16),
            "ao_b": jnp.zeros((H,), jnp.float32),
            "ln1_g": jnp.ones((H,), jnp.float32),
            "ln1_b": jnp.zeros((H,), jnp.float32),
            "f1_w": (std * jax.random.normal(ks[4], (H, intermediate), jnp.float32)
                     ).astype(jnp.bfloat16),
            "f1_b": jnp.zeros((intermediate,), jnp.float32),
            "f2_w": (std * jax.random.normal(ks[5], (intermediate, H), jnp.float32)
                     ).astype(jnp.bfloat16),
            "f2_b": jnp.zeros((H,), jnp.float32),
            "ln2_g": jnp.ones((H,), jnp.float32),
            "ln2_b": jnp.zeros((H,), jnp.float32),
        }
        params["layers"].append(lp)
    return params


# ---------------------------------- main -------------------------------------

if __name__ == "__main__":
    # Small synthetic BERT config (bert-base-uncased scaled down).
    # S=16 keeps bf16 blocks aligned to the (16,128) packing at toy size.
    B, S = 2, 16
    H, nH = 32, 4
    Dh = H // nH
    intermediate = 64
    vocab, max_pos, n_layers = 100, 16, 2

    key = jax.random.PRNGKey(0)
    k_params, k_ids = jax.random.split(key)
    params = init_params(k_params, vocab, max_pos, H, nH, intermediate, n_layers)

    input_ids = jax.random.randint(k_ids, (B, S), 0, vocab, dtype=jnp.int32)
    attention_mask = jnp.concatenate(
        [jnp.ones((B, S - 4), jnp.int32),
         jnp.array([[1, 1, 1, 1], [0, 0, 0, 0]], jnp.int32)], axis=1)

    cls = encoder_bert_forward(params, input_ids, attention_mask, nH=nH, Dh=Dh)
    cls = jax.block_until_ready(cls)
    assert cls.shape == (B, H) and cls.dtype == jnp.float32
    # TODO(synk): loading pretrained HuggingFace weights is out of scope; the
    # BERT parameters above are deterministic synthetic initializations.
    print("KERNEL_OK")
</pallas_src>

<mosaic_0001>
module attributes {stable_mosaic.version = 11 : i64} {
  func.func @_embed_ln_kernel(%arg0: i32, %arg1: memref<1x16x32xf32, #tpu.memory_space<vmem>>, %arg2: memref<16x32xf32, #tpu.memory_space<vmem>>, %arg3: memref<1x32xf32, #tpu.memory_space<vmem>>, %arg4: memref<1x32xf32, #tpu.memory_space<vmem>>, %arg5: memref<1x32xf32, #tpu.memory_space<vmem>>, %arg6: memref<16x32xbf16, #tpu.memory_space<vmem>>) attributes {dimension_semantics = [#tpu.dimension_semantics<parallel>], iteration_bounds = array<i64: 2>, scalar_prefetch = 0 : i64, scratch_operands = 0 : i64, tpu.core_type = #tpu.core_type<tc>, window_params = [{transform_indices = @transform_0, window_bounds = array<i64: 1, 16, 32>}, {pipeline_mode = #tpu.pipeline_mode<synchronous>, transform_indices = @transform_1, window_bounds = array<i64: 16, 32>}, {pipeline_mode = #tpu.pipeline_mode<synchronous>, transform_indices = @transform_2, window_bounds = array<i64: 1, 32>}, {pipeline_mode = #tpu.pipeline_mode<synchronous>, transform_indices = @transform_3, window_bounds = array<i64: 1, 32>}, {pipeline_mode = #tpu.pipeline_mode<synchronous>, transform_indices = @transform_4, window_bounds = array<i64: 1, 32>}, {transform_indices = @transform_5, window_bounds = array<i64: 16, 32>}]} {
    %c0 = arith.constant 0 : index
    %c0_0 = arith.constant 0 : index
    %c0_1 = arith.constant 0 : index
    %0 = vector.load %arg1[%c0, %c0_0, %c0_1] : memref<1x16x32xf32, #tpu.memory_space<vmem>>, vector<1x16x32xf32>
    %1 = vector.shape_cast %0 : vector<1x16x32xf32> to vector<16x32xf32>
    %c0_2 = arith.constant 0 : index
    %c0_3 = arith.constant 0 : index
    %2 = vector.load %arg2[%c0_2, %c0_3] : memref<16x32xf32, #tpu.memory_space<vmem>>, vector<16x32xf32>
    %3 = arith.addf %1, %2 : vector<16x32xf32>
    %c0_4 = arith.constant 0 : index
    %c0_5 = arith.constant 0 : index
    %4 = vector.load %arg3[%c0_4, %c0_5] : memref<1x32xf32, #tpu.memory_space<vmem>>, vector<1x32xf32>
    %5 = vector.broadcast %4 : vector<1x32xf32> to vector<16x32xf32>
    %6 = arith.addf %3, %5 : vector<16x32xf32>
    %cst = arith.constant dense<0.000000e+00> : vector<16xf32>
    %7 = vector.multi_reduction <add>, %6, %cst [1] : vector<16x32xf32> to vector<16xf32>
    %8 = vector.shape_cast %7 : vector<16xf32> to vector<16x1xf32>
    %cst_6 = arith.constant 3.200000e+01 : f32
    %9 = vector.broadcast %cst_6 : f32 to vector<16x1xf32>
    %10 = arith.divf %8, %9 : vector<16x1xf32>
    %11 = vector.broadcast %10 : vector<16x1xf32> to vector<16x32xf32>
    %12 = arith.subf %6, %11 : vector<16x32xf32>
    %13 = arith.mulf %12, %12 : vector<16x32xf32>
    %cst_7 = arith.constant dense<0.000000e+00> : vector<16xf32>
    %14 = vector.multi_reduction <add>, %13, %cst_7 [1] : vector<16x32xf32> to vector<16xf32>
    %15 = vector.shape_cast %14 : vector<16xf32> to vector<16x1xf32>
    %cst_8 = arith.constant 3.200000e+01 : f32
    %16 = vector.broadcast %cst_8 : f32 to vector<16x1xf32>
    %17 = arith.divf %15, %16 : vector<16x1xf32>
    %cst_9 = arith.constant 9.99999996E-13 : f32
    %18 = vector.broadcast %cst_9 : f32 to vector<16x1xf32>
    %19 = arith.addf %17, %18 : vector<16x1xf32>
    %20 = math.rsqrt %19 : vector<16x1xf32>
    %21 = vector.broadcast %20 : vector<16x1xf32> to vector<16x32xf32>
    %22 = arith.mulf %12, %21 : vector<16x32xf32>
    %c0_10 = arith.constant 0 : index
    %c0_11 = arith.constant 0 : index
    %23 = vector.load %arg4[%c0_10, %c0_11] : memref<1x32xf32, #tpu.memory_space<vmem>>, vector<1x32xf32>
    %24 = vector.broadcast %23 : vector<1x32xf32> to vector<16x32xf32>
    %25 = arith.mulf %22, %24 : vector<16x32xf32>
    %c0_12 = arith.constant 0 : index
    %c0_13 = arith.constant 0 : index
    %26 = vector.load %arg5[%c0_12, %c0_13] : memref<1x32xf32, #tpu.memory_space<vmem>>, vector<1x32xf32>
    %27 = vector.broadcast %26 : vector<1x32xf32> to vector<16x32xf32>
    %28 = arith.addf %25, %27 : vector<16x32xf32>
    %29 = arith.truncf %28 : vector<16x32xf32> to vector<16x32xbf16>
    %c0_14 = arith.constant 0 : index
    %c0_15 = arith.constant 0 : index
    %30 = vector.load %arg6[%c0_14, %c0_15] : memref<16x32xbf16, #tpu.memory_space<vmem>>, vector<16x32xbf16>
    tpu.vector_store %arg6[%c0_14, %c0_15], %29 {strides = array<i32>} : memref<16x32xbf16, #tpu.memory_space<vmem>>, vector<16x32xbf16>,
    return
  }
  func.func @transform_0(%arg0: i32) -> (i32, i32, i32) {
    %c0_i32 = arith.constant 0 : i32
    %c0_i32_0 = arith.constant 0 : i32
    %c0_i32_1 = arith.constant 0 : i32
    return %arg0, %c0_i32, %c0_i32_0 : i32, i32, i32
  }
  func.func @transform_1(%arg0: i32) -> (i32, i32) {
    %c0_i32 = arith.constant 0 : i32
    %c0_i32_0 = arith.constant 0 : i32
    %c0_i32_1 = arith.constant 0 : i32
    return %c0_i32, %c0_i32_0 : i32, i32
  }
  func.func @transform_2(%arg0: i32) -> (i32, i32) {
    %c0_i32 = arith.constant 0 : i32
    %c0_i32_0 = arith.constant 0 : i32
    %c0_i32_1 = arith.constant 0 : i32
    return %c0_i32, %c0_i32_0 : i32, i32
  }
  func.func @transform_3(%arg0: i32) -> (i32, i32) {
    %c0_i32 = arith.constant 0 : i32
    %c0_i32_0 = arith.constant 0 : i32
    %c0_i32_1 = arith.constant 0 : i32
    return %c0_i32, %c0_i32_0 : i32, i32
  }
  func.func @transform_4(%arg0: i32) -> (i32, i32) {
    %c0_i32 = arith.constant 0 : i32
    %c0_i32_0 = arith.constant 0 : i32
    %c0_i32_1 = arith.constant 0 : i32
    return %c0_i32, %c0_i32_0 : i32, i32
  }
  func.func @transform_5(%arg0: i32) -> (i32, i32) {
    %c0_i32 = arith.constant 0 : i32
    %c0_i32_0 = arith.constant 0 : i32
    return %arg0, %c0_i32 : i32, i32
  }
}

</mosaic_0001>

<bundles_post_ra>
// kernel: tpu_custom_call.1
= control target key start
LH: loop header
LB: loop body
LE: loop exit
PB: predicated region body
PF: predicated region fallthrough
CT: control target
= control target key end

     0   :  { %10 = vsyncpa [#allocation3], 0  ;;  %s906_s0 = inlined_call_operand.hbm [shape: f32[2,16,32], index: 0, kind: input, shape index: {}]   ;;  %s907_s1 = inlined_call_operand.hbm [shape: f32[16,32], index: 1, kind: input, shape index: {}]   ;;  %s908_s2 = inlined_call_operand.vmem [shape: f32[1,32], index: 2, kind: input, shape index: {}]   ;;  %s909_s3 = inlined_call_operand.vmem [shape: f32[1,32], index: 3, kind: input, shape index: {}]   ;;  %s910_s4 = inlined_call_operand.vmem [shape: f32[1,32], index: 4, kind: input, shape index: {}]   ;;  %s911_s5 = inlined_call_operand.hbm [shape: bf16[32,32], index: 5, kind: output, shape index: {}]  }
   0x1   :  { %12 = vsyncpa [#allocation3 + $0x1], 0 }
   0x2   :  { %13 = vsyncpa [#allocation6], 0 }
   0x3   :  { %14 = vsyncpa [#allocation4], 0 }
   0x4   :  { %16 = vsyncpa [#allocation4 + $0x1], 0  ;;  %s685_s18 = smov 0   ;;  %s687_s19 = smov 0  }
   0x5   :  { %s689_s20 = smov 0   ;;  %s691_s21 = smov 0  }
   0x6 LB: > { %s706_s22 = sadd.s32 4294967295, %s646_s21   ;;  %s428_s23 = sadd.s32 4294967294, %s646_s21   ;;  %s646_s21 = sphi %s691_s21, %s931_s21   ;;  %s642_s20 = sphi %s689_s20, %s930_s20   ;;  %s638_s19 = sphi %s687_s19, %s929_s19   ;;  %s634_s18 = sphi %s685_s18, %s928_s18  }
   0x7   : > { %p42_p0 = scmp.ne.s32.totalorder %s638_s19, %s634_s18  ;;  %p912_p1 = scmp.eq.s32.totalorder %s706_s22, 0 }
   0x8   : > { %p156_p3 = scmp.eq.s32.totalorder %s428_s23, 1  ;;  %p429_p5 = scmp.ge.s32.totalorder %s646_s21, 1 }
   0x9   : > { %p715_p4 = por %p912_p1, %p42_p0  ;;  %p163_p7 = scmp.lt.s32.totalorder %s646_s21, 3 }
   0xa   : > { %p720_p6 = por %p156_p3, %p42_p0  ;;  %s648_s27 = smov [#allocation5]  }
   0xb   : > { %s915_s24 = scalar_select %p715_p4, 1, 0 }
   0xc   : > { %s916_s25 = scalar_select %p720_p6, 1, 0 }
   0xd   : > { %p725_p8 = pnand %p429_p5, %p163_p7  ;;  %s175_s28 = sshll.u32 %s648_s27, 4  ;;  %s729_s28 = int_to_ptr.vmem [resolvable:$true] %s175_s28 }
   0xe   : > { %s741_s30 = sadd.s32 1, %s646_s21   ;;  %s29_s6 = sadd.s32 1, %s642_s20 }
   0xf   : > { %s917_s26 = scalar_select %p725_p8, 1, 0 }
  0x10   : > { %p461_p9 = pneg %p725_p8  ;;  %s26_s7 = ssub.s32 %s646_s21, %s741_s30 }
  0x11   : > { %s518_s10 = scalar_lea.hbm %s907_s1, 256 }
  0x12   : > { %p736_p11 = pnand %p461_p9, %p912_p1  ;;  %p519_p12 = scmp.ne.s32.totalorder %s907_s1, %s518_s10 }
  0x13   : > { %p525_p5 = scmp.lt.u32.totalorder %s518_s10, %s907_s1 }
  0x14   : > { %p520_p13 = pneg %p736_p11 }
  0x16   : > { %p521_p0 = pnand %p520_p13, %p519_p12 }
  0x18   : > { %p522_p3 = pneg %p521_p0 }
  0x1a   : > { %p527_p7 = pnand %p525_p5, %p522_p3 }
  0x1c   : > { %530 = shalt.err (!%p527_p7)
}
  0x1d   : > { %s531_s15 = scalar_lea.vmem %s729_s28, 256  ;;  %p539_p2 = scmp.lt.s32.totalorder %s729_s28, %s729_s28 }
  0x1e   : > { %p532_p9 = scmp.ne.s32.totalorder %s729_s28, %s531_s15  ;;  %p540_p6 = scmp.lt.s32.totalorder %s531_s15, %s531_s15 }
  0x20   : > { %p534_p10 = pnand %p532_p9, %p520_p13  ;;  %p541_p4 = por %p540_p6, %p539_p2 }
  0x22   : > { %p535_p1 = pneg %p534_p10 }
  0x24   : > { %p542_p8 = pnand %p541_p4, %p535_p1 }
  0x26   : > { %545 = shalt.err (!%p542_p8)
}
  0x27   : > { %s649_s16 = smov 128   ;;  %s650_s17 = smov 8  }
  0x28   : > { %464 = dma.hbm_to_vmem [thread:$0]  (!%p736_p11), %s907_s1, 256, %s729_s28, [#allocation6], %s649_s16, %s649_s16, %s650_s17  }
  0x29   : > { %p27_p1 = scmp.eq.s32.totalorder %s26_s7, 0  ;;  %p36_p2 = scmp.ne.s32.totalorder %s642_s20, %s638_s19 }
  0x2a   : > { %p37_p4 = scmp.eq.s32.totalorder %s646_s21, 0  ;;  %p474_p6 = scmp.lt.s32.totalorder %s646_s21, 2 }
  0x2b   : > { %s775_s8 = scalar_select %p27_p1, %s642_s20, %s29_s6  }
  0x2c   : > { %p38_p8 = por %p37_p4, %p36_p2  ;;  %p919_p10 = scmp.eq.s32.totalorder %s706_s22, 1 }
  0x2d   : > { %s198_s29 = sand.u32 1, %s642_s20   ;;  %s449_s10 = sshll.u32 %s646_s21, 8 }
  0x2e   : > { %p779_p12 = por %p919_p10, %p36_p2  ;;  %s432_s11 = sshll.u32 %s198_s29, 4 }
  0x2f   : > { %s788_s14 = scalar_lea.hbm %s906_s0, %s449_s10  ;;  %s202_s28 = scalar_lea.vmem [#allocation2], %s432_s11 }
  0x30   : > { %s209_s6 = sshll.u32 %s202_s28, 4  ;;  %p790_p11 = pnand %p474_p6, %p38_p8  ;;  %s794_s6 = int_to_ptr.vmem [resolvable:$true] %s209_s6 }
  0x31   : > { %s796_s15 = scalar_lea.sflag [#allocation3], %s198_s29  ;;  %s546_s23 = scalar_lea.hbm %s788_s14, 256 }
  0x32   : > { %p547_p13 = scmp.ne.s32.totalorder %s788_s14, %s546_s23  ;;  %p548_p0 = pneg %p790_p11 }
  0x33   : > { %s551_s11 = scalar_lea.hbm %s906_s0, 512  ;;  %p552_p7 = scmp.lt.u32.totalorder %s788_s14, %s906_s0 }
  0x34   : > { %p549_p3 = pnand %p548_p0, %p547_p13  ;;  %p553_p9 = scmp.lt.u32.totalorder %s551_s11, %s546_s23 }
  0x35   : > { %p555_p2 = scmp.lt.u32.totalorder %s546_s23, %s788_s14 }
  0x36   : > { %p550_p5 = pneg %p549_p3  ;;  %p554_p1 = por %p553_p9, %p552_p7 }
  0x38   : > { %p556_p4 = por %p555_p2, %p554_p1 }
  0x3a   : > { %p557_p6 = pnand %p556_p4, %p550_p5 }
  0x3c   : > { %560 = shalt.err (!%p557_p6)
}
  0x3d   : > { %s561_s29 = scalar_lea.vmem %s794_s6, 256  ;;  %s651_s28 = smov [#allocation2]  }
  0x3e   : > { %p562_p8 = scmp.ne.s32.totalorder %s794_s6, %s561_s29  ;;  %s566_s27 = sshll.u32 %s651_s28, 4  ;;  %s567_s27 = int_to_ptr.vmem [resolvable:$false] %s566_s27 }
  0x3f   : > { %s568_s10 = scalar_lea.vmem %s567_s27, 512  ;;  %p569_p3 = scmp.lt.s32.totalorder %s794_s6, %s567_s27 }
  0x40   : > { %p564_p10 = pnand %p562_p8, %p548_p0  ;;  %p570_p7 = scmp.lt.s32.totalorder %s568_s10, %s561_s29 }
  0x42   : > { %p565_p13 = pneg %p564_p10  ;;  %p571_p9 = por %p570_p7, %p569_p3 }
  0x44   : > { %p572_p1 = pnand %p571_p9, %p565_p13 }
  0x46   : > { %575 = shalt.err (!%p572_p1)
}
  0x47   : > { %468 = dma.hbm_to_vmem [thread:$0]  (!%p790_p11), %s788_s14, 256, %s794_s6, %s796_s15, %s649_s16, %s649_s16, %s650_s17  }
  0x48   : > { %p922_p0 = scmp.ne.s32.totalorder %s917_s26, 0 }
  0x49   : > { %s830_s23 = sand.u32 (!%p922_p0), 1, %s638_s19   ;;  %p923_p5 = scmp.ne.s32.totalorder (!%p922_p0), %s915_s24, 0 }
  0x4a   : > { %221 = sbr.rel (%p922_p0) target bundleno = 425 (0x1a9), region = 40  ;;  %s436_s11 = sshll.u32 (!%p922_p0), %s830_s23, 4 }
  0x4b   : > { %s224_s12 = scalar_lea.sflag (!%p922_p0), [#allocation3], %s830_s23  ;;  %s227_s13 = scalar_lea.vmem (!%p922_p0), [#allocation2], %s436_s11 }
  0x51   : > { %621 = dma.done.wait (%p923_p5), %s224_s12, 256  }
  0x52   : > { %623 = vsyncadd (%p923_p5), %s224_s12, 4294967040  ;;  %p924_p2 = scmp.eq.s32.totalorder %s706_s22, 0 }
  0x54   : > { %625 = dma.done.wait (%p924_p2), [#allocation6], 256   ;;  %p925_p11 = pmov %p924_p2 }
  0x55   : > { %v259_v0 = vld [vmem:[%s227_s13] sm:$0xff]  ;;  %v260_v4 = vld [vmem:[%s227_s13 + $0x8] sm:$0xff]  ;;  %vm274_vm0 = vcmask 261120   ;;  %s438_s7 = sshll.u32 %s830_s23, 3  ;;  %vm328_vm1 = vcmask 257024   ;;  %s452_s15 = sshll.u32 %s706_s22, 7 }
  0x56   : > { %627 = vsyncadd (%p925_p11), [#allocation6], 4294967040  ;;  %v261_v1 = vld [vmem:[#allocation5] sm:$0xff]  ;;  %v262_v5 = vld [vmem:[#allocation5 + $0x8] sm:$0xff]  ;;  %s257_s29 = scalar_lea.vmem [#allocation7], %s438_s7  ;;  %s860_s11 = scalar_lea.hbm %s911_s5, %s452_s15 }
  0x57   : > { %v439_v2 = vld [vmem:[%s908_s2] ss:$0 sm:$0xff]  ;;  %v263_v3 = vadd.f32 %v261_v1, %v259_v0  ;;  %v264_v6 = vadd.f32 %v262_v5, %v260_v4  ;;  %s345_s28 = sshll.u32 %s257_s29, 4  ;;  %s332_s12 = scalar_lea.sflag [#allocation4], %s830_s23  ;;  %s862_s28 = int_to_ptr.vmem [resolvable:$true] %s345_s28 }
  0x58   : > { %v440_v28 = vld [vmem:[%s909_s3] ss:$0 sm:$0xff]  ;;  %s576_s13 = scalar_lea.vmem %s862_s28, 128  ;;  %s652_s22 = smov [#allocation7]  }
  0x59   : > { %v272_v7 = vadd.f32 %v439_v2, %v263_v3  ;;  %v273_v8 = vadd.f32 %v439_v2, %v264_v6  ;;  %v441_v30 = vld [vmem:[%s910_s4] ss:$0 sm:$0xff]  ;;  %p577_p4 = scmp.ne.s32.totalorder %s862_s28, %s576_s13  ;;  %s580_s26 = sshll.u32 %s652_s22, 4  ;;  %s581_s26 = int_to_ptr.vmem [resolvable:$false] %s580_s26 }
  0x5a   : > { %s582_s16 = scalar_lea.vmem %s581_s26, 256  ;;  %p583_p10 = scmp.lt.s32.totalorder %s862_s28, %s581_s26 }
  0x5b   : > { %v275_v9 = vsel %vm274_vm0, %v272_v7, 0.0  ;;  %v278_v10 = vsel %vm274_vm0, %v273_v8, 0.0  ;;  %p578_p6 = pnand %p577_p4, %p779_p12  ;;  %p584_p13 = scmp.lt.s32.totalorder %s582_s16, %s576_s13 }
  0x5c   : > { %276 = vadd.xlane.f32.xlu0 %v275_v9 }
  0x5d   : > { %p579_p8 = pneg %p578_p6  ;;  %p585_p3 = por %p584_p13, %p583_p10 }
  0x5f   : > { %p586_p7 = pnand %p585_p3, %p579_p8 }
  0x60   : > { %279 = vadd.xlane.f32.xlu0 %v278_v10 }
  0xe9   : > { %v277_v11 = vpop.xlane.xlu0 %276 }
  0xea   : > { %v282_v12 = vmul.f32 0.03125, %v277_v11 }
  0xec   : > { %v284_v13 = vsub.f32 %v272_v7, %v282_v12 }
  0xed   : > { %v280_v14 = vpop.xlane.xlu0 %279 }
  0xee   : > { %v283_v15 = vmul.f32 0.03125, %v280_v14  ;;  %v286_v16 = vmul.f32 %v284_v13, %v284_v13 }
  0xf0   : > { %v285_v17 = vsub.f32 %v273_v8, %v283_v15  ;;  %v288_v18 = vsel %vm274_vm0, %v286_v16, 0.0 }
  0xf1   : > { %289 = vadd.xlane.f32.xlu1 %v288_v18 }
  0xf2   : > { %v287_v19 = vmul.f32 %v285_v17, %v285_v17 }
  0xf4   : > { %v291_v20 = vsel %vm274_vm0, %v287_v19, 0.0 }
  0xf5   : > { %292 = vadd.xlane.f32.xlu1 %v291_v20 }
 0x17e   : > { %v290_v21 = vpop.xlane.xlu1 %289 }
 0x17f   : > { %v294_v22 = vmul.f32 0.03125, %v290_v21 }
 0x181   : > { %v296_v23 = vadd.f32 1e-12, %v294_v22 }
 0x182   : > { %v293_v24 = vpop.xlane.xlu1 %292 }
 0x183   : > { %514 = vrsqrt.f32 %v296_v23  ;;  %v295_v25 = vmul.f32 0.03125, %v293_v24 }
 0x185   : > { %v297_v26 = vadd.f32 1e-12, %v295_v25 }
 0x187   : > { %516 = vrsqrt.f32 %v297_v26 }
 0x18d   : > { %v515_v27 = vpop.eup %514 }
 0x18e   : > { %v300_v29 = vmul.f32 %v515_v27, %v284_v13 }
 0x190   : > { %v309_v31 = vmul.f32 %v440_v28, %v300_v29 }
 0x191   : > { %v517_v32 = vpop.eup %516 }
 0x192   : > { %v318_v33 = vadd.f32 %v441_v30, %v309_v31  ;;  %v301_v34 = vmul.f32 %v517_v32, %v285_v17 }
 0x194   : > { %v450_v35 = vpack.c.bf16 %v318_v33, %v318_v33  ;;  %v310_v36 = vmul.f32 %v440_v28, %v301_v34 }
 0x196   : > { %v319_v37 = vadd.f32 %v441_v30, %v310_v36  ;;  %329 = vst.msk [vmem:[%s257_s29] sm:$0xf] %vm328_vm1, %v450_v35 }
 0x198   : > { %v451_v38 = vpack.c.bf16 %v319_v37, %v319_v37 }
 0x19a   : > { %330 = vst.msk [vmem:[%s257_s29 + $0x4] sm:$0xf] %vm328_vm1, %v451_v38 }
 0x19b   : > { %589 = shalt.err (!%p586_p7)
}
 0x19c   : > { %s590_s24 = scalar_lea.hbm %s860_s11, 128  ;;  %s594_s6 = scalar_lea.hbm %s911_s5, 256 }
 0x19d   : > { %p591_p9 = scmp.ne.s32.totalorder %s860_s11, %s590_s24  ;;  %p595_p5 = scmp.lt.u32.totalorder %s860_s11, %s911_s5 }
 0x19e   : > { %p596_p2 = scmp.lt.u32.totalorder %s594_s6, %s590_s24  ;;  %p598_p4 = scmp.lt.u32.totalorder %s590_s24, %s860_s11 }
 0x19f   : > { %p592_p1 = pnand %p591_p9, %p779_p12 }
 0x1a0   : > { %p597_p11 = por %p596_p2, %p595_p5 }
 0x1a1   : > { %p593_p0 = pneg %p592_p1 }
 0x1a2   : > { %p599_p6 = por %p598_p4, %p597_p11 }
 0x1a4   : > { %p600_p8 = pnand %p599_p6, %p593_p0 }
 0x1a6   : > { %603 = shalt.err (!%p600_p8)
}
 0x1a7   : > { %s653_s29 = smov 64   ;;  %s654_s27 = smov 4  }
 0x1a8   : > { %459 = dma.vmem_to_hbm [thread:$0]  (%p779_p12), %s862_s28, 128, %s860_s11, %s332_s12, %s653_s29, %s653_s29, %s654_s27  }
 0x1a9 PF: > { %s360_s10 = sand.u32 1, %s634_s18   ;;  %p926_p10 = scmp.ne.s32.totalorder %s916_s25, 0 }
 0x1aa   : > { %p927_p13 = scmp.ge.s32.totalorder %s646_s21, 2  ;;  %s361_s13 = scalar_lea.sflag [#allocation4], %s360_s10 }
 0x1ac   : > { %p470_p3 = pnand %p927_p13, %p926_p10 }
 0x1ae   : > { %629 = dma.done.wait (!%p470_p3), %s361_s13, 128  }
 0x1af   : > { %631 = vsyncadd (!%p470_p3), %s361_s13, 4294967168  ;;  %p19_p7 = scmp.ge.s32.totalorder %s741_s30, 4   ;;  %s928_s18 = smov %s638_s19 }
 0x1b0   : > { %s929_s19 = smov %s642_s20  ;;  %s930_s20 = smov %s775_s8 }
 0x1b1   : > { %s931_s21 = smov %s741_s30  ;;  %21 = sbr.rel (!%p19_p7) target bundleno = 6 (0x6), region = 89 }
 0x1b8   :  { %366 = vsyncpa [#allocation3], 1 }
 0x1b9   :  { %368 = vsyncpa [#allocation3 + $0x1], 1 }
 0x1ba   :  { %369 = vsyncpa [#allocation6], 1 }
 0x1bb   :  { %370 = vsyncpa [#allocation4], 1 }
 0x1bc   :  { %372 = vsyncpa [#allocation4 + $0x1], 1 }

</bundles_post_ra>
